<compile_context>
chip_gen: v6e
topology: v6e:2x2x1
jax: 0.10.0
libtpu: 0.0.40
codegen_flags: <defaults>
</compile_context>

<pallas_src>
import jax
import jax.numpy as jnp
from jax.experimental import pallas as pl
from jax.experimental.pallas import tpu as pltpu


def _make_kernel(num_layers, fma_first_layer):
    """Fused (conv+BN+ReLU)*L + running global max, points-on-lanes layout."""

    def kernel(x_ref, *refs):
        # refs = (w0, t0, w1, t1, ..., o_ref)
        o_ref = refs[-1]
        params = refs[:-1]

        n = pl.program_id(2)

        # Running-max accumulator lives in the revisited output block (index is
        # constant along the innermost, "arbitrary" points axis).  -inf init makes the
        # result independent of the sign of the activations.
        @pl.when(n == 0)
        def _():
            o_ref[...] = jnp.full(o_ref.shape, -jnp.inf, dtype=o_ref.dtype)

        h = x_ref[0]                                     # (C_in, n_tile) f32

        for l in range(num_layers):
            w_ref = params[2 * l]                        # (C_l+1, C_l)  BN-folded
            t = params[2 * l + 1][...]                   # (C_l+1, 1)    BN-folded, f32
            if l == 0 and fma_first_layer:
                # K = C_in (e.g. 3) is far below the MXU contraction width: a few VPU
                # broadcast multiply-adds; bias added once at the end (implicit
                # lane-broadcast, same pattern every bias add uses).
                w = w_ref[...]                           # (C_1, C_in) f32
                y = w[:, 0:1] * h[0:1, :]
                for k in range(1, w.shape[1]):
                    y = y + w[:, k:k + 1] * h[k:k + 1, :]
                y = y + t
            else:
                w = w_ref[...]                           # bf16 (MXU-native)
                y = jnp.dot(w, h.astype(w.dtype),
                            preferred_element_type=jnp.float32) + t
            h = jnp.maximum(y, 0.0)                      # (C_l+1, n_tile) f32

        # Cross-lane (points) max for this tile -> fold into the running max.
        # The lane reduce lands on the otherwise-idle XLU slot.
        tile_max = jnp.max(h, axis=1, keepdims=True)         # (F, 1)
        o_ref[...] = jnp.maximum(o_ref[...], tile_max[None])  # (1, F, 1)

    return kernel


def pointnet_forward(x, layers, *, n_tile=None, transposed_input=False,
                     interpret=False):
    """x: (B, N, C_in) f32 (or (B, C_in, N) if transposed_input=True).

    layers: list of (W (C_in_l, C_out_l), conv_bias (1, C_out_l),
                     bn_scale (1, C_out_l), bn_shift (1, C_out_l)).
    Returns the global feature (B, feat_size), matching the PyTorch module with
    global_feat=True and eval-mode batchnorm.
    """
    if transposed_input:
        B, C_in, N = x.shape
        x_t = x
    else:
        B, N, C_in = x.shape
        x_t = jnp.transpose(x, (0, 2, 1))        # the PyTorch (B, D, N) layout
    x_t = x_t.astype(jnp.float32)

    out_dims = [W.shape[1] for (W, _, _, _) in layers]
    feat_size = out_dims[-1]
    fma_first_layer = (C_in <= 8)

    # ---- one-time parameter folding + transpose to (C_out, C_in) ----
    #   relu(((x @ W) + b) * s + t)  ==  relu(x @ (W * s) + (b * s + t))
    # Weights go to bf16 (MXU-native) except the FMA first layer; biases stay f32 so
    # the whole epilogue (bias/ReLU/max) is f32 on every generation.
    flat_params = []
    for idx, (W, b, s, t) in enumerate(layers):
        Wf = (W * s).T                                   # (C_out, C_in)
        tf = (b * s + t).T                               # (C_out, 1)
        w_dtype = jnp.float32 if (idx == 0 and fma_first_layer) else jnp.bfloat16
        flat_params.append(Wf.astype(w_dtype))
        flat_params.append(tf.astype(jnp.float32))

    # ---- points tile: lane dim, multiple of 128, sized by live-activation budget ----
    if n_tile is None:
        per_point_bytes = 4 * (C_in + sum(out_dims))     # f32 intermediates, conservative
        n_tile = (8 * 1024 * 1024) // per_point_bytes
    n_tile = max(128, min(8192, int(n_tile)))
    n_tile = (n_tile // 128) * 128
    n_tile = min(n_tile, -(-N // 128) * 128)

    total_tiles = -(-N // n_tile)

    # v7x has 2 TensorCores fed via the parallel grid axes; with B == 1 split the
    # points range in two partial-max blocks and combine them in the wrapper.  The
    # points axis inside each split stays sequential ("arbitrary") for the revisited
    # output accumulation.
    n_split = 2 if (B == 1 and total_tiles >= 2) else 1
    total_tiles = -(-total_tiles // n_split) * n_split
    tiles_per_split = total_tiles // n_split

    n_pad = total_tiles * n_tile
    if n_pad != N:
        # Edge-replicate padding: padded columns duplicate the last real point, so
        # they never change the global max -> no in-kernel tail mask needed.
        x_t = jnp.pad(x_t, ((0, 0), (0, 0), (0, n_pad - N)), mode="edge")

    kernel = _make_kernel(len(layers), fma_first_layer)

    # ---- specs: stream lane-dense x tiles, keep (tiny) weights resident ----
    in_specs = [pl.BlockSpec((1, C_in, n_tile),
                             lambda b, s, n: (b, 0, s * tiles_per_split + n))]
    for p in flat_params:
        in_specs.append(pl.BlockSpec(p.shape, lambda b, s, n: (0, 0)))

    out = pl.pallas_call(
        kernel,
        out_shape=jax.ShapeDtypeStruct((B * n_split, feat_size, 1), jnp.float32),
        grid=(B, n_split, tiles_per_split),
        in_specs=in_specs,
        out_specs=pl.BlockSpec((1, feat_size, 1),
                               lambda b, s, n: (b * n_split + s, 0, 0)),
        compiler_params=pltpu.CompilerParams(
            dimension_semantics=("parallel", "parallel", "arbitrary"),
            vmem_limit_bytes=32 * 1024 * 1024),
        interpret=interpret,
    )(x_t, *flat_params)

    # Combine per-split partial maxima (exact: accumulators were -inf initialised).
    out = out.reshape(B, n_split, feat_size)
    return jnp.max(out, axis=1)


def reference_forward(x, layers):
    """Pure-JAX f32 reference (same math as the PyTorch module, eval-mode BN)."""
    h = x
    for (W, b, s, t) in layers:
        h = jnp.maximum((jnp.einsum('bnc,cd->bnd', h, W) + b) * s + t, 0.0)
    return jnp.max(h, axis=1)


def make_layer_params(key, c_in, c_out, eps=1e-5):
    k_w, k_b, k_g, k_be, k_m, k_v = jax.random.split(key, 6)
    W = jax.random.normal(k_w, (c_in, c_out), jnp.float32) / jnp.sqrt(float(c_in))
    b = 0.1 * jax.random.normal(k_b, (1, c_out), jnp.float32)
    gamma = 1.0 + 0.1 * jax.random.normal(k_g, (1, c_out), jnp.float32)
    beta = 0.1 * jax.random.normal(k_be, (1, c_out), jnp.float32)
    running_mean = 0.05 * jax.random.normal(k_m, (1, c_out), jnp.float32)
    running_var = jax.random.uniform(k_v, (1, c_out), jnp.float32,
                                     minval=0.5, maxval=1.5)
    scale = gamma * jax.lax.rsqrt(running_var + eps)
    shift = beta - running_mean * scale
    return (W, b, scale, shift)


if __name__ == "__main__":
    # Shapes consistent with the module:
    #   in_channels=3, layer_dims=[16, 32], feat_size=64 -> 3 BasicBlocks
    in_channels = 3
    layer_dims = [16, 32]
    feat_size = 64
    dims = [in_channels] + layer_dims + [feat_size]      # 3 -> 16 -> 32 -> 64

    root = jax.random.PRNGKey(0)
    k_x1, k_x2, *k_layers = jax.random.split(root, 2 + len(dims) - 1)
    layers = [make_layer_params(k_layers[i], dims[i], dims[i + 1])
              for i in range(len(dims) - 1)]

    # bf16 matmul operands (f32 accumulation) -> compare to f32 reference with a
    # slightly loosened tolerance.
    RTOL = ATOL = 3e-2

    # Multi-tile + ragged tail: B=2, N=300, 128-point tiles -> 3 tiles/batch, last
    # tile edge-padded; exercises the running max across tiles.
    B, N = 2, 300
    x = jax.random.normal(k_x1, (B, N, in_channels), jnp.float32)
    out = jax.block_until_ready(pointnet_forward(x, layers, n_tile=128))
    ref = jax.block_until_ready(reference_forward(x, layers))
    assert out.shape == (B, feat_size), out.shape
    assert jnp.allclose(out, ref, rtol=RTOL, atol=ATOL), "mismatch (multi-tile)"

    # B == 1 path: points range split across two parallel grid blocks (keeps both
    # v7x TensorCores busy); partial maxima combined in the wrapper.
    x1 = jax.random.normal(k_x2, (1, 600, in_channels), jnp.float32)
    out1 = jax.block_until_ready(pointnet_forward(x1, layers, n_tile=128))
    ref1 = jax.block_until_ready(reference_forward(x1, layers))
    assert out1.shape == (1, feat_size), out1.shape
    assert jnp.allclose(out1, ref1, rtol=RTOL, atol=ATOL), "mismatch (split)"

    # Default (auto) tile selection path.
    out_d = jax.block_until_ready(pointnet_forward(x, layers))
    assert jnp.allclose(out_d, ref, rtol=RTOL, atol=ATOL), "mismatch (default tile)"

    print("KERNEL_OK")
</pallas_src>

<mosaic_0001>
module attributes {stable_mosaic.version = 11 : i64} {
  func.func @kernel(%arg0: i32, %arg1: i32, %arg2: i32, %arg3: memref<1x3x128xf32, #tpu.memory_space<vmem>>, %arg4: memref<16x3xf32, #tpu.memory_space<vmem>>, %arg5: memref<16x1xf32, #tpu.memory_space<vmem>>, %arg6: memref<32x16xbf16, #tpu.memory_space<vmem>>, %arg7: memref<32x1xf32, #tpu.memory_space<vmem>>, %arg8: memref<64x32xbf16, #tpu.memory_space<vmem>>, %arg9: memref<64x1xf32, #tpu.memory_space<vmem>>, %arg10: memref<1x64x1xf32, #tpu.memory_space<vmem>>) attributes {dimension_semantics = [#tpu.dimension_semantics<parallel>, #tpu.dimension_semantics<parallel>, #tpu.dimension_semantics<arbitrary>], iteration_bounds = array<i64: 2, 1, 3>, scalar_prefetch = 0 : i64, scratch_operands = 0 : i64, tpu.core_type = #tpu.core_type<tc>, window_params = [{transform_indices = @transform_0, window_bounds = array<i64: 1, 3, 128>}, {pipeline_mode = #tpu.pipeline_mode<synchronous>, transform_indices = @transform_1, window_bounds = array<i64: 16, 3>}, {pipeline_mode = #tpu.pipeline_mode<synchronous>, transform_indices = @transform_2, window_bounds = array<i64: 16, 1>}, {pipeline_mode = #tpu.pipeline_mode<synchronous>, transform_indices = @transform_3, window_bounds = array<i64: 32, 16>}, {pipeline_mode = #tpu.pipeline_mode<synchronous>, transform_indices = @transform_4, window_bounds = array<i64: 32, 1>}, {pipeline_mode = #tpu.pipeline_mode<synchronous>, transform_indices = @transform_5, window_bounds = array<i64: 64, 32>}, {pipeline_mode = #tpu.pipeline_mode<synchronous>, transform_indices = @transform_6, window_bounds = array<i64: 64, 1>}, {transform_indices = @transform_7, window_bounds = array<i64: 1, 64, 1>}]} {
    %c0_i32 = arith.constant 0 : i32
    %0 = arith.cmpi eq, %arg2, %c0_i32 : i32
    %1 = arith.extui %0 : i1 to i32
    %c0_i32_0 = arith.constant 0 : i32
    %2 = arith.cmpi ne, %1, %c0_i32_0 : i32
    scf.if %2 {
      %cst_26 = arith.constant 0xFF800000 : f32
      %50 = vector.broadcast %cst_26 : f32 to vector<1x64x1xf32>
      %c0_27 = arith.constant 0 : index
      %c0_28 = arith.constant 0 : index
      %c0_29 = arith.constant 0 : index
      %51 = vector.load %arg10[%c0_27, %c0_28, %c0_29] : memref<1x64x1xf32, #tpu.memory_space<vmem>>, vector<1x64x1xf32>
      tpu.vector_store %arg10[%c0_27, %c0_28, %c0_29], %50 {strides = array<i32>} : memref<1x64x1xf32, #tpu.memory_space<vmem>>, vector<1x64x1xf32>,
    } else {
    }
    %c0 = arith.constant 0 : index
    %c0_1 = arith.constant 0 : index
    %c0_2 = arith.constant 0 : index
    %3 = vector.load %arg3[%c0, %c0_1, %c0_2] : memref<1x3x128xf32, #tpu.memory_space<vmem>>, vector<1x3x128xf32>
    %4 = vector.shape_cast %3 : vector<1x3x128xf32> to vector<3x128xf32>
    %c0_3 = arith.constant 0 : index
    %c0_4 = arith.constant 0 : index
    %5 = vector.load %arg5[%c0_3, %c0_4] : memref<16x1xf32, #tpu.memory_space<vmem>>, vector<16x1xf32>
    %c0_5 = arith.constant 0 : index
    %c0_6 = arith.constant 0 : index
    %6 = vector.load %arg4[%c0_5, %c0_6] : memref<16x3xf32, #tpu.memory_space<vmem>>, vector<16x3xf32>
    %7 = vector.extract_strided_slice %6 {offsets = [0, 0], sizes = [16, 1], strides = [1, 1]} : vector<16x3xf32> to vector<16x1xf32>
    %8 = vector.extract_strided_slice %4 {offsets = [0, 0], sizes = [1, 128], strides = [1, 1]} : vector<3x128xf32> to vector<1x128xf32>
    %9 = vector.broadcast %7 : vector<16x1xf32> to vector<16x128xf32>
    %10 = vector.broadcast %8 : vector<1x128xf32> to vector<16x128xf32>
    %11 = arith.mulf %9, %10 : vector<16x128xf32>
    %12 = vector.extract_strided_slice %6 {offsets = [0, 1], sizes = [16, 1], strides = [1, 1]} : vector<16x3xf32> to vector<16x1xf32>
    %13 = vector.extract_strided_slice %4 {offsets = [1, 0], sizes = [1, 128], strides = [1, 1]} : vector<3x128xf32> to vector<1x128xf32>
    %14 = vector.broadcast %12 : vector<16x1xf32> to vector<16x128xf32>
    %15 = vector.broadcast %13 : vector<1x128xf32> to vector<16x128xf32>
    %16 = arith.mulf %14, %15 : vector<16x128xf32>
    %17 = arith.addf %11, %16 : vector<16x128xf32>
    %18 = vector.extract_strided_slice %6 {offsets = [0, 2], sizes = [16, 1], strides = [1, 1]} : vector<16x3xf32> to vector<16x1xf32>
    %19 = vector.extract_strided_slice %4 {offsets = [2, 0], sizes = [1, 128], strides = [1, 1]} : vector<3x128xf32> to vector<1x128xf32>
    %20 = vector.broadcast %18 : vector<16x1xf32> to vector<16x128xf32>
    %21 = vector.broadcast %19 : vector<1x128xf32> to vector<16x128xf32>
    %22 = arith.mulf %20, %21 : vector<16x128xf32>
    %23 = arith.addf %17, %22 : vector<16x128xf32>
    %24 = vector.broadcast %5 : vector<16x1xf32> to vector<16x128xf32>
    %25 = arith.addf %23, %24 : vector<16x128xf32>
    %cst = arith.constant 0.000000e+00 : f32
    %26 = vector.broadcast %cst : f32 to vector<16x128xf32>
    %27 = arith.maximumf %25, %26 : vector<16x128xf32>
    %c0_7 = arith.constant 0 : index
    %c0_8 = arith.constant 0 : index
    %28 = vector.load %arg7[%c0_7, %c0_8] : memref<32x1xf32, #tpu.memory_space<vmem>>, vector<32x1xf32>
    %c0_9 = arith.constant 0 : index
    %c0_10 = arith.constant 0 : index
    %29 = vector.load %arg6[%c0_9, %c0_10] : memref<32x16xbf16, #tpu.memory_space<vmem>>, vector<32x16xbf16>
    %30 = arith.truncf %27 : vector<16x128xf32> to vector<16x128xbf16>
    %cst_11 = arith.constant dense<0.000000e+00> : vector<32x128xf32>
    %31 = tpu.matmul %29, %30, %cst_11 {dimension_numbers = #tpu.dot_dimension_numbers<[1], [0], [0], [1], [0, 0, 1, 1], [], []>} : vector<32x16xbf16>, vector<16x128xbf16>, vector<32x128xf32> -> vector<32x128xf32>
    %32 = vector.broadcast %28 : vector<32x1xf32> to vector<32x128xf32>
    %33 = arith.addf %31, %32 : vector<32x128xf32>
    %cst_12 = arith.constant 0.000000e+00 : f32
    %34 = vector.broadcast %cst_12 : f32 to vector<32x128xf32>
    %35 = arith.maximumf %33, %34 : vector<32x128xf32>
    %c0_13 = arith.constant 0 : index
    %c0_14 = arith.constant 0 : index
    %36 = vector.load %arg9[%c0_13, %c0_14] : memref<64x1xf32, #tpu.memory_space<vmem>>, vector<64x1xf32>
    %c0_15 = arith.constant 0 : index
    %c0_16 = arith.constant 0 : index
    %37 = vector.load %arg8[%c0_15, %c0_16] : memref<64x32xbf16, #tpu.memory_space<vmem>>, vector<64x32xbf16>
    %38 = arith.truncf %35 : vector<32x128xf32> to vector<32x128xbf16>
    %cst_17 = arith.constant dense<0.000000e+00> : vector<64x128xf32>
    %39 = tpu.matmul %37, %38, %cst_17 {dimension_numbers = #tpu.dot_dimension_numbers<[1], [0], [0], [1], [0, 0, 1, 1], [], []>} : vector<64x32xbf16>, vector<32x128xbf16>, vector<64x128xf32> -> vector<64x128xf32>
    %40 = vector.broadcast %36 : vector<64x1xf32> to vector<64x128xf32>
    %41 = arith.addf %39, %40 : vector<64x128xf32>
    %cst_18 = arith.constant 0.000000e+00 : f32
    %42 = vector.broadcast %cst_18 : f32 to vector<64x128xf32>
    %43 = arith.maximumf %41, %42 : vector<64x128xf32>
    %cst_19 = arith.constant dense<0xFF800000> : vector<64xf32>
    %44 = vector.multi_reduction <maximumf>, %43, %cst_19 [1] : vector<64x128xf32> to vector<64xf32>
    %45 = vector.shape_cast %44 : vector<64xf32> to vector<64x1xf32>
    %c0_20 = arith.constant 0 : index
    %c0_21 = arith.constant 0 : index
    %c0_22 = arith.constant 0 : index
    %46 = vector.load %arg10[%c0_20, %c0_21, %c0_22] : memref<1x64x1xf32, #tpu.memory_space<vmem>>, vector<1x64x1xf32>
    %47 = vector.shape_cast %45 : vector<64x1xf32> to vector<1x64x1xf32>
    %48 = arith.maximumf %46, %47 : vector<1x64x1xf32>
    %c0_23 = arith.constant 0 : index
    %c0_24 = arith.constant 0 : index
    %c0_25 = arith.constant 0 : index
    %49 = vector.load %arg10[%c0_23, %c0_24, %c0_25] : memref<1x64x1xf32, #tpu.memory_space<vmem>>, vector<1x64x1xf32>
    tpu.vector_store %arg10[%c0_23, %c0_24, %c0_25], %48 {strides = array<i32>} : memref<1x64x1xf32, #tpu.memory_space<vmem>>, vector<1x64x1xf32>,
    return
  }
  func.func @transform_0(%arg0: i32, %arg1: i32, %arg2: i32) -> (i32, i32, i32) {
    %c3_i32 = arith.constant 3 : i32
    %0 = arith.muli %arg1, %c3_i32 : i32
    %1 = arith.addi %0, %arg2 : i32
    %c0_i32 = arith.constant 0 : i32
    %c0_i32_0 = arith.constant 0 : i32
    return %arg0, %c0_i32, %1 : i32, i32, i32
  }
  func.func @transform_1(%arg0: i32, %arg1: i32, %arg2: i32) -> (i32, i32) {
    %c0_i32 = arith.constant 0 : i32
    %c0_i32_0 = arith.constant 0 : i32
    %c0_i32_1 = arith.constant 0 : i32
    return %c0_i32, %c0_i32_0 : i32, i32
  }
  func.func @transform_2(%arg0: i32, %arg1: i32, %arg2: i32) -> (i32, i32) {
    %c0_i32 = arith.constant 0 : i32
    %c0_i32_0 = arith.constant 0 : i32
    %c0_i32_1 = arith.constant 0 : i32
    return %c0_i32, %c0_i32_0 : i32, i32
  }
  func.func @transform_3(%arg0: i32, %arg1: i32, %arg2: i32) -> (i32, i32) {
    %c0_i32 = arith.constant 0 : i32
    %c0_i32_0 = arith.constant 0 : i32
    %c0_i32_1 = arith.constant 0 : i32
    return %c0_i32, %c0_i32_0 : i32, i32
  }
  func.func @transform_4(%arg0: i32, %arg1: i32, %arg2: i32) -> (i32, i32) {
    %c0_i32 = arith.constant 0 : i32
    %c0_i32_0 = arith.constant 0 : i32
    %c0_i32_1 = arith.constant 0 : i32
    return %c0_i32, %c0_i32_0 : i32, i32
  }
  func.func @transform_5(%arg0: i32, %arg1: i32, %arg2: i32) -> (i32, i32) {
    %c0_i32 = arith.constant 0 : i32
    %c0_i32_0 = arith.constant 0 : i32
    %c0_i32_1 = arith.constant 0 : i32
    return %c0_i32, %c0_i32_0 : i32, i32
  }
  func.func @transform_6(%arg0: i32, %arg1: i32, %arg2: i32) -> (i32, i32) {
    %c0_i32 = arith.constant 0 : i32
    %c0_i32_0 = arith.constant 0 : i32
    %c0_i32_1 = arith.constant 0 : i32
    return %c0_i32, %c0_i32_0 : i32, i32
  }
  func.func @transform_7(%arg0: i32, %arg1: i32, %arg2: i32) -> (i32, i32, i32) {
    %c1_i32 = arith.constant 1 : i32
    %0 = arith.muli %arg0, %c1_i32 : i32
    %1 = arith.addi %0, %arg1 : i32
    %c0_i32 = arith.constant 0 : i32
    %c0_i32_0 = arith.constant 0 : i32
    %c0_i32_1 = arith.constant 0 : i32
    return %1, %c0_i32, %c0_i32_0 : i32, i32, i32
  }
}

</mosaic_0001>

<bundles_post_ra>
// kernel: tpu_custom_call.1
= control target key start
LH: loop header
LB: loop body
LE: loop exit
PB: predicated region body
PF: predicated region fallthrough
CT: control target
= control target key end

     0   :  { %s988_s24 = smov 0   ;;  %s990_s25 = smov 0   ;;  %s1148_s0 = inlined_call_operand.vmem [shape: f32[2,3,384], index: 0, kind: input, shape index: {}]   ;;  %s1149_s1 = inlined_call_operand.vmem [shape: f32[16,3], index: 1, kind: input, shape index: {}]   ;;  %s1150_s2 = inlined_call_operand.vmem [shape: f32[16,1], index: 2, kind: input, shape index: {}]   ;;  %s1151_s3 = inlined_call_operand.vmem [shape: bf16[32,16], index: 3, kind: input, shape index: {}]   ;;  %s1152_s4 = inlined_call_operand.vmem [shape: f32[32,1], index: 4, kind: input, shape index: {}]   ;;  %s1153_s5 = inlined_call_operand.vmem [shape: bf16[64,32], index: 5, kind: input, shape index: {}]   ;;  %s1154_s6 = inlined_call_operand.vmem [shape: f32[64,1], index: 6, kind: input, shape index: {}]   ;;  %s1155_s7 = inlined_call_operand.vmem [shape: f32[2,64,1], index: 7, kind: output, shape index: {}]  }
   0x1   :  { %s992_s26 = smov 0   ;;  %s994_s27 = smov 0  }
   0x2   :  { %s996_s28 = smov 0  }
   0x3 LB: > { %s29_s29 = sadd.s32 1, %s934_s26  ;;  %s36_s30 = sadd.s32 1, %s938_s27  ;;  %s942_s28 = sphi %s996_s28, %s17_s28   ;;  %s938_s27 = sphi %s994_s27, %s1159_s27   ;;  %s934_s26 = sphi %s992_s26, %s1158_s26   ;;  %s930_s25 = sphi %s990_s25, %s1157_s25   ;;  %s926_s24 = sphi %s988_s24, %s1156_s24  }
   0x4   : > { %p30_p0 = scmp.ge.s32.totalorder %s29_s29, 3  ;;  %p796_p1 = scmp.ge.s32.totalorder %s942_s28, 1 }
   0x5   : > { %p271_p2 = scmp.lt.s32.totalorder %s942_s28, 7 }
   0x6   : > { %s1161_s29 = smov (%p30_p0, %s29_s29), 0  ;;  %s1163_s30 = smov (!%p30_p0, %s36_s30), %s938_s27 }
   0x7   : > { %p272_p3 = pnand %p796_p1, %p271_p2  ;;  %p38_p4 = scmp.ge.s32.totalorder %s1163_s30, 2 }
   0x8   : > { %p311_p5 = scmp.lt.s32.totalorder (!%p272_p3), %s930_s25, 1  ;;  %p313_p6 = scmp.lt.s32.totalorder (!%p272_p3), %s926_s24, 2 }
   0x9   : > { %s1165_s30 = smov (%p38_p4, %s1163_s30), 0  ;;  %275 = sbr.rel (%p272_p3) target bundleno = 742 (0x2e6), region = 48 }
   0xa   : > { %p800_p7 = scmp.ne.s32.totalorder (!%p272_p3), %s926_s24, 0 }
   0xe   : > { %s1167_s25 = smov (!%p311_p5, %s930_s25), 1 }
   0xf   : > { %s314_s8 = scalar_select %p313_p6, %s926_s24, 2 }
  0x10   : > { %s847_s9 = smul.u32 3, %s1167_s25  ;;  %s815_s10 = sshll.u32 %s1167_s25, 6 }
  0x11   : > { %s1021_s13 = scalar_lea.vmem %s1155_s7, %s815_s10  ;;  %332 = sbr.rel (%p800_p7) target bundleno = 27 (0x1b), region = 52 }
  0x12   : > { %s316_s14 = sadd.s32 %s847_s9, %s314_s8 }
  0x13   : > { %s797_s15 = sshll.u32 %s316_s14, 2 }
  0x14   : > { %s1026_s18 = scalar_lea.vmem %s1148_s0, %s797_s15 }
  0x16   : > { %vm333_vm0 = vcmask 7168   ;;  %v944_v0 = vmov -inf  }
  0x17   : > { %334 = vst.msk [vmem:[%s1021_s13] sm:$0xff] %vm333_vm0, %v944_v0  ;;  %335 = vst.msk [vmem:[%s1021_s13 + $0x8] sm:$0xff] %vm333_vm0, %v944_v0 }
  0x18   : > { %336 = vst.msk [vmem:[%s1021_s13 + $0x10] sm:$0xff] %vm333_vm0, %v944_v0  ;;  %337 = vst.msk [vmem:[%s1021_s13 + $0x18] sm:$0xff] %vm333_vm0, %v944_v0 }
  0x19   : > { %338 = vst.msk [vmem:[%s1021_s13 + $0x20] sm:$0xff] %vm333_vm0, %v944_v0  ;;  %339 = vst.msk [vmem:[%s1021_s13 + $0x28] sm:$0xff] %vm333_vm0, %v944_v0 }
  0x1a   : > { %340 = vst.msk [vmem:[%s1021_s13 + $0x30] sm:$0xff] %vm333_vm0, %v944_v0  ;;  %341 = vst.msk [vmem:[%s1021_s13 + $0x38] sm:$0xff] %vm333_vm0, %v944_v0 }
  0x1b PF: > { %v345_v1 = vld [vmem:[%s1149_s1] sm:$0xff]  ;;  %v945_v2 = vmov 1   ;;  %v946_v3 = vmov 0   ;;  %v346_v4 = vld [vmem:[%s1149_s1 + $0x8] sm:$0xff]  ;;  %v947_v5 = vmov 2   ;;  %v411_v9 = vld [vmem:[%s1152_s4 + $0x10] sm:$0xff]  ;;  %v357_v21 = vlaneseq }
  0x1c   : > { %893 = vset.pattern.permute.xlu1 %v945_v2  ;;  %892 = vset.pattern.permute.xlu0 %v946_v3  ;;  %v344_v6 = vld [vmem:[%s1150_s2 + $0x8] sm:$0xff]  ;;  %v343_v7 = vld [vmem:[%s1150_s2] sm:$0xff]  ;;  %vm448_vm1 = vcmask 130048   ;;  %v412_v12 = vld [vmem:[%s1152_s4 + $0x18] sm:$0xff]  ;;  %vm586_vm2 = vcmask 261120   ;;  %vm704_vm3 = vcmask 7168  }
  0x1d   : > { %364 = vperm.xlu1 %893, %v345_v1   ;;  %349 = vperm.xlu0 %892, %v345_v1   ;;  %v409_v8 = vld [vmem:[%s1152_s4] sm:$0xff]  ;;  %v510_v13 = vld [vmem:[%s1154_s6 + $0x10] sm:$0xff]  ;;  %v410_v14 = vld [vmem:[%s1152_s4 + $0x8] sm:$0xff]  ;;  %v358_v22 = vshrl.u32 %v357_v21, 7 }
  0x1e   : > { %v898_v10 = vld [vmem:[%s1151_s3] sm:$0xff]   ;;  %v509_v16 = vld [vmem:[%s1154_s6 + $0x8] sm:$0xff]  ;;  %v514_v17 = vld [vmem:[%s1154_s6 + $0x30] sm:$0xff] }
  0x1f   : > { %v508_v11 = vld [vmem:[%s1154_s6] sm:$0xff]  ;;  %827 = vmatprep.mubr.msk.bf16.mxu0 %vm448_vm1, %v898_v10  ;;  %v511_v18 = vld [vmem:[%s1154_s6 + $0x18] sm:$0xff]  ;;  %v513_v19 = vld [vmem:[%s1154_s6 + $0x28] sm:$0xff]  ;;  %v373_v23 = vsub.s32 1, %v358_v22  ;;  %v359_v24 = vsub.s32 0, %v358_v22  ;;  %v389_v28 = vsub.s32 2, %v358_v22 }
  0x20   : > { %v512_v15 = vld [vmem:[%s1154_s6 + $0x20] sm:$0xff]  ;;  %v515_v20 = vld [vmem:[%s1154_s6 + $0x38] sm:$0xff]  ;;  %v899_v53 = vld [vmem:[%s1151_s3 + $0x8] sm:$0xff]  }
  0x21   : > { %368 = vperm.xlu1 %893, %v346_v4   ;;  %354 = vperm.xlu0 %892, %v346_v4   ;;  %v342_v25 = vld [vmem:[%s1026_s18] sm:$0x7]  ;;  %v901_v55 = vld [vmem:[%s1153_s5 + $0x10] sm:$0xff]   ;;  %v902_v10 = vld [vmem:[%s1153_s5 + $0x8] sm:$0xff]  }
  0x22   : > { %v374_v29 = vrot.slane %v342_v25, %v373_v23  ;;  %v360_v30 = vrot.slane %v342_v25, %v359_v24  ;;  %v390_v33 = vrot.slane %v342_v25, %v389_v28  ;;  %v900_v54 = vld [vmem:[%s1153_s5] sm:$0xff]   ;;  %839 = vmatprep.mubr.msk.bf16.mxu1 %vm586_vm2, %v901_v55  ;;  %v691_v55 = vld [vmem:[%s1021_s13 + $0x18] sm:$0xff] }
  0x25   : > { %895 = vset.pattern.permute.xlu1 %v947_v5  ;;  %894 = vset.pattern.permute.xlu0 %v947_v5 }
  0x26   : > { %384 = vperm.xlu1 %895, %v346_v4   ;;  %380 = vperm.xlu0 %894, %v345_v1  }
  0x2a   : > { %896 = vset.pattern.permute.xlu1 %v946_v3  ;;  %897 = vset.pattern.permute.xlu0 %v946_v3 }
  0x2b   : > { %402 = vperm.xlu0 %897, %v344_v6   ;;  %397 = vperm.xlu1 %896, %v343_v7  }
  0x2f   : > { %420 = vperm.xlu0 %897, %v409_v8   ;;  %430 = vperm.xlu1 %896, %v411_v9  }
  0x33   : > { %528 = vperm.xlu0 %897, %v508_v11   ;;  %435 = vperm.xlu1 %896, %v412_v12   ;;  %v903_v11 = vld [vmem:[%s1153_s5 + $0x18] sm:$0xff]  }
  0x37   : > { %538 = vperm.xlu0 %897, %v510_v13   ;;  %425 = vperm.xlu1 %896, %v410_v14  }
  0x3b   : > { %548 = vperm.xlu0 %897, %v512_v15   ;;  %533 = vperm.xlu1 %896, %v509_v16  }
  0x3f   : > { %558 = vperm.xlu0 %897, %v514_v17   ;;  %543 = vperm.xlu1 %896, %v511_v18  }
  0x43   : > { %553 = vperm.xlu1 %896, %v513_v19  }
  0x47   : > { %563 = vperm.xlu1 %896, %v515_v20  }
  0x98   : > { %v365_v26 = vpop.permute.xlu1 %364  ;;  %v350_v27 = vpop.permute.xlu0 %349 }
  0x99   : > { %v375_v34 = vmul.f32 %v374_v29, %v365_v26  ;;  %v361_v35 = vmul.f32 %v360_v30, %v350_v27 }
  0x9b   : > { %v377_v40 = vadd.f32 %v375_v34, %v361_v35 }
  0x9c   : > { %v369_v31 = vpop.permute.xlu1 %368  ;;  %v355_v32 = vpop.permute.xlu0 %354 }
  0x9d   : > { %v376_v36 = vmul.f32 %v374_v29, %v369_v31  ;;  %v362_v37 = vmul.f32 %v360_v30, %v355_v32 }
  0x9f   : > { %v378_v41 = vadd.f32 %v376_v36, %v362_v37 }
  0xa1   : > { %v385_v38 = vpop.permute.xlu1 %384  ;;  %v381_v39 = vpop.permute.xlu0 %380 }
  0xa2   : > { %v392_v42 = vmul.f32 %v390_v33, %v385_v38  ;;  %v391_v43 = vmul.f32 %v390_v33, %v381_v39 }
  0xa4   : > { %v394_v44 = vadd.f32 %v392_v42, %v378_v41  ;;  %v393_v45 = vadd.f32 %v391_v43, %v377_v40 }
  0xa6   : > { %v403_v46 = vpop.permute.xlu0 %402  ;;  %v398_v47 = vpop.permute.xlu1 %397 }
  0xa7   : > { %v406_v48 = vadd.f32 %v403_v46, %v394_v44  ;;  %v405_v49 = vadd.f32 %v398_v47, %v393_v45  ;;  %v690_v44 = vld [vmem:[%s1021_s13 + $0x10] sm:$0xff]  ;;  %v692_v46 = vld [vmem:[%s1021_s13 + $0x20] sm:$0xff] }
  0xa9   : > { %v408_v50 = vmax.f32 %v406_v48, 0.0  ;;  %v407_v51 = vmax.f32 %v405_v49, 0.0  ;;  %v688_v49 = vld [vmem:[%s1021_s13] sm:$0xff] }
  0xaa   : > { %v431_v56 = vpop.permute.xlu1 %430  ;;  %v421_v61 = vpop.permute.xlu0 %420 }
  0xab   : > { %v417_v52 = vpack.c.bf16 %v408_v50, %v407_v51 }
  0xad   : > { %825 = vmatprep.subr.bf16.mxu0 %v417_v52 }
  0xae   : > { %826 = vmatpush3.bf16.msra.mxu0 %v417_v52  ;;  %v436_v57 = vpop.permute.xlu1 %435  ;;  %v529_v12 = vpop.permute.xlu0 %528  ;;  %v689_v52 = vld [vmem:[%s1021_s13 + $0x8] sm:$0xff] }
  0xb1   : > { %828 = vmatmul.mubr.msk.bf16.vlgmr.msra.gmra.mxu0 %vm448_vm1, %v899_v53 }
  0xb2   : > { %835 = vmatprep.mubr.msk.bf16.mxu0 %vm586_vm2, %v900_v54  ;;  %v426_v1 = vpop.permute.xlu1 %425  ;;  %v539_v13 = vpop.permute.xlu0 %538 }
  0xb6   : > { %v534_v14 = vpop.permute.xlu1 %533  ;;  %v549_v17 = vpop.permute.xlu0 %548 }
  0xba   : > { %v544_v18 = vpop.permute.xlu1 %543  ;;  %v559_v29 = vpop.permute.xlu0 %558 }
  0xbe   : > { %v554_v33 = vpop.permute.xlu1 %553 }
  0xc2   : > { %v564_v40 = vpop.permute.xlu1 %563 }
 0x171   : > { %v829_v58 = vpop.f32.mrf.mxu0 }
 0x172   : > { %v498_v60 = vadd.f32 %v829_v58, %v431_v56  ;;  %v694_v58 = vld [vmem:[%s1021_s13 + $0x30] sm:$0xff] }
 0x173   : > { %v489_v59 = vpop.f32.mrf.mxu0 }
 0x174   : > { %v490_v63 = vadd.f32 %v489_v59, %v421_v61  ;;  %v506_v3 = vmax.f32 %v498_v60, 0.0  ;;  %v693_v61 = vld [vmem:[%s1021_s13 + $0x28] sm:$0xff] }
 0x175   : > { %v830_v62 = vpop.f32.mrf.mxu0 }
 0x176   : > { %v501_v0 = vadd.f32 %v830_v62, %v436_v57  ;;  %v504_v6 = vmax.f32 %v490_v63, 0.0 }
 0x177   : > { %v492_v2 = vpop.f32.mrf.mxu0 }
 0x178   : > { %v507_v4 = vmax.f32 %v501_v0, 0.0  ;;  %v493_v5 = vadd.f32 %v492_v2, %v426_v1  ;;  %v695_v1 = vld [vmem:[%s1021_s13 + $0x38] sm:$0xff] }
 0x17a   : > { %v525_v7 = vpack.c.bf16 %v507_v4, %v506_v3  ;;  %v505_v8 = vmax.f32 %v493_v5, 0.0 }
 0x17c   : > { %v524_v9 = vpack.c.bf16 %v505_v8, %v504_v6  ;;  %831 = vmatprep.subr.bf16.mxu0 %v525_v7  ;;  %843 = vmatprep.subr.bf16.mxu1 %v525_v7 }
 0x17d   : > { %832 = vmatpush3.bf16.msra.mxu0 %v525_v7  ;;  %845 = vmatpush3.bf16.msra.mxu1 %v525_v7 }
 0x17e   : > { %833 = vmatprep.subr.bf16.mxu0 %v524_v9  ;;  %844 = vmatprep.subr.bf16.mxu1 %v524_v9 }
 0x181   : > { %834 = vmatpush3.bf16.msra.mxu0 %v524_v9  ;;  %846 = vmatpush3.bf16.msra.mxu1 %v524_v9 }
 0x184   : > { %836 = vmatmul.mubr.msk.bf16.vlgmr.msra.gmra.mxu0 %vm586_vm2, %v902_v10  ;;  %840 = vmatmul.mubr.msk.bf16.vlgmr.msra.gmra.mxu1 %vm586_vm2, %v903_v11 }
 0x244   : > { %v837_v15 = vpop.f32.mrf.mxu0  ;;  %v841_v16 = vpop.f32.mrf.mxu1 }
 0x245   : > { %v642_v19 = vadd.f32 %v837_v15, %v539_v13  ;;  %v658_v35 = vadd.f32 %v841_v16, %v559_v29 }
 0x246   : > { %v633_v20 = vpop.f32.mrf.mxu0  ;;  %v649_v21 = vpop.f32.mrf.mxu1 }
 0x247   : > { %v666_v22 = vmax.f32 %v642_v19, 0.0  ;;  %v634_v23 = vadd.f32 %v633_v20, %v529_v12  ;;  %v650_v24 = vadd.f32 %v649_v21, %v549_v17  ;;  %v670_v39 = vmax.f32 %v658_v35, 0.0 }
 0x248   : > { %v838_v25 = vpop.f32.mrf.mxu0  ;;  %v842_v26 = vpop.f32.mrf.mxu1 }
 0x249   : > { %v668_v27 = vmax.f32 %v650_v24, 0.0  ;;  %676 = vmax.xlane.f32.xlu0 %v666_v22  ;;  %v664_v30 = vmax.f32 %v634_v23, 0.0  ;;  %v645_v31 = vadd.f32 %v838_v25, %v544_v18  ;;  %v661_v41 = vadd.f32 %v842_v26, %v564_v40 }
 0x24a   : > { %v636_v28 = vpop.f32.mrf.mxu0  ;;  %v652_v34 = vpop.f32.mrf.mxu1 }
 0x24b   : > { %v637_v32 = vadd.f32 %v636_v28, %v534_v14  ;;  %680 = vmax.xlane.f32.xlu1 %v668_v27  ;;  %v667_v37 = vmax.f32 %v645_v31, 0.0  ;;  %v653_v38 = vadd.f32 %v652_v34, %v554_v33  ;;  %v671_v43 = vmax.f32 %v661_v41, 0.0 }
 0x24d   : > { %v665_v36 = vmax.f32 %v637_v32, 0.0  ;;  %672 = vmax.xlane.f32.xlu0 %v664_v30  ;;  %v669_v42 = vmax.f32 %v653_v38, 0.0 }
 0x24f   : > { %674 = vmax.xlane.f32.xlu1 %v665_v36 }
 0x251   : > { %678 = vmax.xlane.f32.xlu0 %v667_v37 }
 0x253   : > { %684 = vmax.xlane.f32.xlu1 %v670_v39 }
 0x255   : > { %682 = vmax.xlane.f32.xlu0 %v669_v42 }
 0x259   : > { %686 = vmax.xlane.f32.xlu0 %v671_v43 }
 0x2d2   : > { %v677_v45 = vpop.xlane.xlu0 %676 }
 0x2d3   : > { %v698_v47 = vmax.f32 %v690_v44, %v677_v45 }
 0x2d4   : > { %v681_v48 = vpop.xlane.xlu1 %680 }
 0x2d5   : > { %707 = vst.msk [vmem:[%s1021_s13 + $0x10] sm:$0xff] %vm704_vm3, %v698_v47  ;;  %v700_v50 = vmax.f32 %v692_v46, %v681_v48 }
 0x2d6   : > { %v673_v51 = vpop.xlane.xlu0 %672 }
 0x2d7   : > { %709 = vst.msk [vmem:[%s1021_s13 + $0x20] sm:$0xff] %vm704_vm3, %v700_v50  ;;  %v696_v53 = vmax.f32 %v688_v49, %v673_v51 }
 0x2d8   : > { %v675_v54 = vpop.xlane.xlu1 %674 }
 0x2d9   : > { %705 = vst.msk [vmem:[%s1021_s13] sm:$0xff] %vm704_vm3, %v696_v53  ;;  %v697_v56 = vmax.f32 %v689_v52, %v675_v54 }
 0x2da   : > { %v679_v57 = vpop.xlane.xlu0 %678 }
 0x2db   : > { %706 = vst.msk [vmem:[%s1021_s13 + $0x8] sm:$0xff] %vm704_vm3, %v697_v56  ;;  %v699_v59 = vmax.f32 %v691_v55, %v679_v57 }
 0x2dc   : > { %v685_v60 = vpop.xlane.xlu1 %684 }
 0x2dd   : > { %708 = vst.msk [vmem:[%s1021_s13 + $0x18] sm:$0xff] %vm704_vm3, %v699_v59  ;;  %v702_v62 = vmax.f32 %v694_v58, %v685_v60 }
 0x2de   : > { %v683_v63 = vpop.xlane.xlu0 %682 }
 0x2df   : > { %711 = vst.msk [vmem:[%s1021_s13 + $0x30] sm:$0xff] %vm704_vm3, %v702_v62  ;;  %v701_v0 = vmax.f32 %v693_v61, %v683_v63 }
 0x2e1   : > { %710 = vst.msk [vmem:[%s1021_s13 + $0x28] sm:$0xff] %vm704_vm3, %v701_v0 }
 0x2e2   : > { %v687_v2 = vpop.xlane.xlu0 %686 }
 0x2e3   : > { %v703_v3 = vmax.f32 %v695_v1, %v687_v2 }
 0x2e5   : > { %712 = vst.msk [vmem:[%s1021_s13 + $0x38] sm:$0xff] %vm704_vm3, %v703_v3 }
 0x2e6 PF: > { %s17_s28 = sadd.s32 1, %s942_s28   ;;  %s1156_s24 = smov %s934_s26 }
 0x2e7   : > { %p14_p8 = scmp.ge.s32.totalorder %s17_s28, 8   ;;  %s1157_s25 = smov %s938_s27 }
 0x2e8   : > { %s1158_s26 = smov %s1161_s29  ;;  %s1159_s27 = smov %s1165_s30 }
 0x2e9   :  { %16 = sbr.rel (!%p14_p8) target bundleno = 3 (0x3), region = 82 }

</bundles_post_ra>
